<compile_context>
chip_gen: v5e
topology: v5e:2x2
jax: 0.10.0
libtpu: 0.0.40
codegen_flags: <defaults>
</compile_context>

<pallas_src>
import functools

import jax
import jax.numpy as jnp
from jax.experimental import pallas as pl
from jax.experimental.pallas import tpu as pltpu

LANE = 128                     # vreg lane width
SUBLANE = 8                    # vreg sublane width (f32)
MAX_TILE_B = 512               # per-step batch tile (rows)
MIN_SPLIT_B = 128              # if B_pad >= 2*MIN_SPLIT_B, use >=2 grid steps
VMEM_LIMIT_BYTES = 32 * 1024 * 1024   # raise v5e's 16MiB default; < v7x physical


def _round_up(n, m):
    return ((n + m - 1) // m) * m


# --------------------------------------------------------------------------
# Probe (runs eagerly, outside jit): is pipeline_mode=pl.Buffered(1) accepted
# by this jax / TPU for the main pallas_call pipeline?  Cached globally.
# --------------------------------------------------------------------------
_BUFFERED_OK = None


def _probe_single_buffered():
    global _BUFFERED_OK
    if _BUFFERED_OK is not None:
        return _BUFFERED_OK

    def _probe_kernel(x_ref, o_ref):
        o_ref[...] = x_ref[...]

    try:
        spec = pl.BlockSpec((SUBLANE, LANE), lambda i: (0, 0),
                            pipeline_mode=pl.Buffered(1))
        out = pl.pallas_call(
            _probe_kernel,
            out_shape=jax.ShapeDtypeStruct((SUBLANE, LANE), jnp.float32),
            grid=(1,),
            in_specs=[spec],
            out_specs=pl.BlockSpec((SUBLANE, LANE), lambda i: (0, 0)),
        )(jnp.zeros((SUBLANE, LANE), jnp.float32))
        jax.block_until_ready(out)
        _BUFFERED_OK = True
    except Exception:
        _BUFFERED_OK = False
    return _BUFFERED_OK


# --------------------------------------------------------------------------
# Parameter init (matches weights_init_uniform_rule) and one-time padding.
# --------------------------------------------------------------------------
def init_decoder_params(key, dims):
    """`dims` are the *encoder* dims; the decoder reverses them (dims[::-1])."""
    decoder_dims = list(dims[::-1])
    params = []
    for i in range(len(decoder_dims) - 1):
        d_in, d_out = decoder_dims[i], decoder_dims[i + 1]
        key, sub = jax.random.split(key)
        bound = 1.0 / float(jnp.sqrt(jnp.float32(d_in)))
        # PyTorch stores (out, in); we keep (in, out) so the kernel does x @ W.
        w = jax.random.uniform(sub, (d_in, d_out), jnp.float32,
                               minval=-bound, maxval=bound)
        b = jnp.zeros((d_out,), jnp.float32)
        params.append((w, b))
    return params


def prepare_decoder_params(params, d_in0, mxu_dtype=jnp.bfloat16):
    """Pad weights/biases to lane multiples ONCE (outside the per-call hot path).

    Weights are stored in `mxu_dtype` (bf16 recommended on v5e/v6e/v7x); biases
    stay f32 (bias add + ReLU are done in f32 inside the kernel).
    Returns (ws_pad, bs_pad, dims, dims_pad).
    """
    _probe_single_buffered()   # eager, outside jit; caches capability flag
    dims = [int(d_in0)] + [int(w.shape[1]) for (w, _) in params]
    dims_pad = [_round_up(d, LANE) for d in dims]
    ws_pad, bs_pad = [], []
    for li, (w, b) in enumerate(params):
        d_in, d_out = w.shape
        w_pad = (jnp.zeros((dims_pad[li], dims_pad[li + 1]), mxu_dtype)
                 .at[:d_in, :d_out].set(w.astype(mxu_dtype)))
        b_pad = (jnp.zeros((1, dims_pad[li + 1]), jnp.float32)
                 .at[:, :d_out].set(b.reshape(1, -1).astype(jnp.float32)))
        ws_pad.append(w_pad)
        bs_pad.append(b_pad)
    return ws_pad, bs_pad, tuple(dims), tuple(dims_pad)


# --------------------------------------------------------------------------
# Fused kernel: every Linear (+ReLU) layer in one pallas_call invocation.
# --------------------------------------------------------------------------
def _make_fused_decoder_kernel(n_layers, store_hidden):
    """Kernel args: x_ref, (w_ref, b_ref) * n_layers, out_ref(s)."""

    def kernel(*refs):
        x_ref = refs[0]
        out_refs = refs[1 + 2 * n_layers:]
        h = x_ref[...].astype(jnp.float32)
        for i in range(n_layers):
            w_ref = refs[1 + 2 * i]
            b_ref = refs[2 + 2 * i]
            a = h.astype(w_ref.dtype)           # bf16 MXU operands if weights are bf16
            h = jnp.dot(a, w_ref[...], preferred_element_type=jnp.float32)
            h = h + b_ref[...]                  # (1, D) broadcasts over rows, f32
            if i < n_layers - 1:
                h = jnp.maximum(h, jnp.float32(0.0))   # ReLU (hidden layers only)
                # TODO(synk): training-mode dropout RNG not implemented (eval / p=0)
                if store_hidden:
                    out_refs[i][...] = h.astype(out_refs[i].dtype)
            else:
                out_refs[-1][...] = h.astype(out_refs[-1].dtype)

    return kernel


def decoder_forward(x, ws_pad, bs_pad, dims, dims_pad, *, return_layer_outs=True):
    """Fused decoder forward.  `ws_pad`/`bs_pad` from prepare_decoder_params.

    Mirrors Decoder.forward: hidden layers ReLU (+dropout=identity), last layer
    plain Linear.  Returns (output, layer_inputs) when return_layer_outs=True.
    """
    B, D0 = x.shape
    assert D0 == dims[0], "input feature dim mismatch"
    n_layers = len(ws_pad)

    # ---- batch tiling: pad to sublane only, cdiv grid (partial last tile ok)
    B_pad = _round_up(B, SUBLANE)
    if B_pad > MAX_TILE_B:
        tile_b = MAX_TILE_B
    elif B_pad >= 2 * MIN_SPLIT_B:
        # give the v7x second TensorCore something to do (>=2 parallel steps)
        tile_b = _round_up(pl.cdiv(B_pad, 2), SUBLANE)
    else:
        tile_b = B_pad
    grid = (pl.cdiv(B_pad, tile_b),)

    # ---- lane/sublane-dense activation padding (only x is padded per call)
    if B == B_pad and D0 == dims_pad[0]:
        x_pad = x
    else:
        x_pad = jnp.zeros((B_pad, dims_pad[0]), x.dtype).at[:B, :D0].set(x)

    use_sb = bool(_BUFFERED_OK)   # single-buffer grid-invariant weights if supported

    def _resident_spec(shape):
        if use_sb:
            return pl.BlockSpec(shape, lambda i: (0, 0),
                                pipeline_mode=pl.Buffered(1))
        return pl.BlockSpec(shape, lambda i: (0, 0))

    inputs = [x_pad]
    in_specs = [pl.BlockSpec((tile_b, dims_pad[0]), lambda i: (i, 0))]
    for li in range(n_layers):
        inputs += [ws_pad[li], bs_pad[li]]
        in_specs += [
            _resident_spec((dims_pad[li], dims_pad[li + 1])),
            _resident_spec((1, dims_pad[li + 1])),
        ]

    # Outputs: hidden layers only materialized to HBM if requested.
    out_layers = list(range(n_layers)) if return_layer_outs else [n_layers - 1]
    out_shape = tuple(jax.ShapeDtypeStruct((B_pad, dims_pad[li + 1]), x.dtype)
                      for li in out_layers)
    out_specs = tuple(pl.BlockSpec((tile_b, dims_pad[li + 1]), lambda i: (i, 0))
                      for li in out_layers)

    outs = pl.pallas_call(
        _make_fused_decoder_kernel(n_layers, store_hidden=return_layer_outs),
        out_shape=out_shape,
        grid=grid,
        in_specs=in_specs,
        out_specs=out_specs,
        compiler_params=pltpu.CompilerParams(
            dimension_semantics=("parallel",),
            vmem_limit_bytes=VMEM_LIMIT_BYTES),
    )(*inputs)

    if not return_layer_outs:
        return outs[0][:B, :dims[-1]]

    outs = [outs[k][:B, :dims[li + 1]] for k, li in enumerate(out_layers)]
    layer_inputs = [x] + outs          # dropout(out) == out (p=0 / eval mode)
    output = outs[-1]
    return output, layer_inputs


if __name__ == "__main__":
    # Encoder dims (as passed to Decoder.__init__); decoder reverses them:
    # decoder_dimensions = [32, 16, 8] -> Linear(32,16)+ReLU, Linear(16,8)
    dims = [8, 16, 32]
    batch = 8

    key = jax.random.PRNGKey(0)
    key, xkey = jax.random.split(key)
    x = jax.random.normal(xkey, (batch, dims[-1]), jnp.float32)  # latent (B, 32)

    params = init_decoder_params(key, dims)

    # --- exact-precision run (f32 MXU operands) for a tight correctness check
    ws32, bs32, ldims, ldims_pad = prepare_decoder_params(
        params, dims[-1], mxu_dtype=jnp.float32)
    fwd32 = jax.jit(functools.partial(
        decoder_forward, dims=ldims, dims_pad=ldims_pad, return_layer_outs=True))
    out32, layer_inputs32 = fwd32(x, ws32, bs32)
    jax.block_until_ready(out32)
    for t in layer_inputs32:
        jax.block_until_ready(t)

    # --- recommended config: bf16 MXU operands, f32 accumulate
    wsbf, bsbf, _, _ = prepare_decoder_params(params, dims[-1],
                                              mxu_dtype=jnp.bfloat16)
    fwd_bf = jax.jit(functools.partial(
        decoder_forward, dims=ldims, dims_pad=ldims_pad, return_layer_outs=True))
    out_bf, _ = fwd_bf(x, wsbf, bsbf)
    jax.block_until_ready(out_bf)

    # --- inference-only path (no hidden-layer HBM writeback)
    fwd_last = jax.jit(functools.partial(
        decoder_forward, dims=ldims, dims_pad=ldims_pad, return_layer_outs=False))
    out_last = fwd_last(x, ws32, bs32)
    jax.block_until_ready(out_last)

    # sanity: shapes follow the reversed dims
    assert out32.shape == (batch, dims[0])
    assert out_last.shape == (batch, dims[0])
    assert [t.shape[1] for t in layer_inputs32] == [32, 16, 8]

    # correctness check against a pure-jnp reference of the same math
    ref = x
    for i, (w, b) in enumerate(params):
        ref = ref @ w + b.reshape(1, -1)
        if i < len(params) - 1:
            ref = jnp.maximum(ref, 0.0)
    hidden_ref = jnp.maximum(x @ params[0][0] + params[0][1].reshape(1, -1), 0.0)

    assert jnp.allclose(out32, ref, atol=1e-4, rtol=1e-4), "f32 mismatch vs reference"
    assert jnp.allclose(layer_inputs32[1], hidden_ref, atol=1e-4, rtol=1e-4), \
        "hidden layer mismatch"
    assert jnp.allclose(out_last, ref, atol=1e-4, rtol=1e-4), \
        "return_layer_outs=False mismatch"
    assert jnp.allclose(out_bf, ref, atol=2e-2, rtol=2e-2), \
        "bf16 MXU mismatch vs f32 reference"

    print("KERNEL_OK")
</pallas_src>

<mosaic_0001>
module attributes {stable_mosaic.version = 11 : i64} {
  func.func @_probe_kernel(%arg0: i32, %arg1: memref<8x128xf32, #tpu.memory_space<vmem>>, %arg2: memref<8x128xf32, #tpu.memory_space<vmem>>) attributes {dimension_semantics = [#tpu.dimension_semantics<arbitrary>], iteration_bounds = array<i64: 1>, scalar_prefetch = 0 : i64, scratch_operands = 0 : i64, tpu.core_type = #tpu.core_type<tc>, window_params = [{pipeline_mode = #tpu.pipeline_mode<synchronous>, transform_indices = @transform_0, window_bounds = array<i64: 8, 128>}, {pipeline_mode = #tpu.pipeline_mode<synchronous>, transform_indices = @transform_1, window_bounds = array<i64: 8, 128>}]} {
    %c0 = arith.constant 0 : index
    %c0_0 = arith.constant 0 : index
    %0 = vector.load %arg1[%c0, %c0_0] : memref<8x128xf32, #tpu.memory_space<vmem>>, vector<8x128xf32>
    %c0_1 = arith.constant 0 : index
    %c0_2 = arith.constant 0 : index
    %1 = vector.load %arg2[%c0_1, %c0_2] : memref<8x128xf32, #tpu.memory_space<vmem>>, vector<8x128xf32>
    tpu.vector_store %arg2[%c0_1, %c0_2], %0 {strides = array<i32>} : memref<8x128xf32, #tpu.memory_space<vmem>>, vector<8x128xf32>,
    return
  }
  func.func @transform_0(%arg0: i32) -> (i32, i32) {
    %c0_i32 = arith.constant 0 : i32
    %c0_i32_0 = arith.constant 0 : i32
    %c0_i32_1 = arith.constant 0 : i32
    return %c0_i32, %c0_i32_0 : i32, i32
  }
  func.func @transform_1(%arg0: i32) -> (i32, i32) {
    %c0_i32 = arith.constant 0 : i32
    %c0_i32_0 = arith.constant 0 : i32
    %c0_i32_1 = arith.constant 0 : i32
    return %c0_i32, %c0_i32_0 : i32, i32
  }
}

module attributes {stable_mosaic.version = 11 : i64} {
  func.func @kernel(%arg0: i32, %arg1: memref<8x128xf32, #tpu.memory_space<vmem>>, %arg2: memref<128x128xf32, #tpu.memory_space<vmem>>, %arg3: memref<1x128xf32, #tpu.memory_space<vmem>>, %arg4: memref<128x128xf32, #tpu.memory_space<vmem>>, %arg5: memref<1x128xf32, #tpu.memory_space<vmem>>, %arg6: memref<8x128xf32, #tpu.memory_space<vmem>>, %arg7: memref<8x128xf32, #tpu.memory_space<vmem>>) attributes {dimension_semantics = [#tpu.dimension_semantics<parallel>], iteration_bounds = array<i64: 1>, scalar_prefetch = 0 : i64, scratch_operands = 0 : i64, tpu.core_type = #tpu.core_type<tc>, window_params = [{transform_indices = @transform_0, window_bounds = array<i64: 8, 128>}, {pipeline_mode = #tpu.pipeline_mode<synchronous>, transform_indices = @transform_1, window_bounds = array<i64: 128, 128>}, {pipeline_mode = #tpu.pipeline_mode<synchronous>, transform_indices = @transform_2, window_bounds = array<i64: 1, 128>}, {pipeline_mode = #tpu.pipeline_mode<synchronous>, transform_indices = @transform_3, window_bounds = array<i64: 128, 128>}, {pipeline_mode = #tpu.pipeline_mode<synchronous>, transform_indices = @transform_4, window_bounds = array<i64: 1, 128>}, {transform_indices = @transform_5, window_bounds = array<i64: 8, 128>}, {transform_indices = @transform_6, window_bounds = array<i64: 8, 128>}]} {
    %c0 = arith.constant 0 : index
    %c0_0 = arith.constant 0 : index
    %0 = vector.load %arg1[%c0, %c0_0] : memref<8x128xf32, #tpu.memory_space<vmem>>, vector<8x128xf32>
    %c0_1 = arith.constant 0 : index
    %c0_2 = arith.constant 0 : index
    %1 = vector.load %arg2[%c0_1, %c0_2] : memref<128x128xf32, #tpu.memory_space<vmem>>, vector<128x128xf32>
    %cst = arith.constant dense<0.000000e+00> : vector<8x128xf32>
    %2 = tpu.matmul %0, %1, %cst {dimension_numbers = #tpu.dot_dimension_numbers<[1], [0], [0], [1], [0, 0, 1, 1], [], []>} : vector<8x128xf32>, vector<128x128xf32>, vector<8x128xf32> -> vector<8x128xf32>
    %c0_3 = arith.constant 0 : index
    %c0_4 = arith.constant 0 : index
    %3 = vector.load %arg3[%c0_3, %c0_4] : memref<1x128xf32, #tpu.memory_space<vmem>>, vector<1x128xf32>
    %4 = vector.broadcast %3 : vector<1x128xf32> to vector<8x128xf32>
    %5 = arith.addf %2, %4 : vector<8x128xf32>
    %cst_5 = arith.constant 0.000000e+00 : f32
    %6 = vector.broadcast %cst_5 : f32 to vector<8x128xf32>
    %7 = arith.maximumf %5, %6 : vector<8x128xf32>
    %c0_6 = arith.constant 0 : index
    %c0_7 = arith.constant 0 : index
    %8 = vector.load %arg6[%c0_6, %c0_7] : memref<8x128xf32, #tpu.memory_space<vmem>>, vector<8x128xf32>
    tpu.vector_store %arg6[%c0_6, %c0_7], %7 {strides = array<i32>} : memref<8x128xf32, #tpu.memory_space<vmem>>, vector<8x128xf32>,
    %c0_8 = arith.constant 0 : index
    %c0_9 = arith.constant 0 : index
    %9 = vector.load %arg4[%c0_8, %c0_9] : memref<128x128xf32, #tpu.memory_space<vmem>>, vector<128x128xf32>
    %cst_10 = arith.constant dense<0.000000e+00> : vector<8x128xf32>
    %10 = tpu.matmul %7, %9, %cst_10 {dimension_numbers = #tpu.dot_dimension_numbers<[1], [0], [0], [1], [0, 0, 1, 1], [], []>} : vector<8x128xf32>, vector<128x128xf32>, vector<8x128xf32> -> vector<8x128xf32>
    %c0_11 = arith.constant 0 : index
    %c0_12 = arith.constant 0 : index
    %11 = vector.load %arg5[%c0_11, %c0_12] : memref<1x128xf32, #tpu.memory_space<vmem>>, vector<1x128xf32>
    %12 = vector.broadcast %11 : vector<1x128xf32> to vector<8x128xf32>
    %13 = arith.addf %10, %12 : vector<8x128xf32>
    %c0_13 = arith.constant 0 : index
    %c0_14 = arith.constant 0 : index
    %14 = vector.load %arg7[%c0_13, %c0_14] : memref<8x128xf32, #tpu.memory_space<vmem>>, vector<8x128xf32>
    tpu.vector_store %arg7[%c0_13, %c0_14], %13 {strides = array<i32>} : memref<8x128xf32, #tpu.memory_space<vmem>>, vector<8x128xf32>,
    return
  }
  func.func @transform_0(%arg0: i32) -> (i32, i32) {
    %c0_i32 = arith.constant 0 : i32
    %c0_i32_0 = arith.constant 0 : i32
    return %arg0, %c0_i32 : i32, i32
  }
  func.func @transform_1(%arg0: i32) -> (i32, i32) {
    %c0_i32 = arith.constant 0 : i32
    %c0_i32_0 = arith.constant 0 : i32
    %c0_i32_1 = arith.constant 0 : i32
    return %c0_i32, %c0_i32_0 : i32, i32
  }
  func.func @transform_2(%arg0: i32) -> (i32, i32) {
    %c0_i32 = arith.constant 0 : i32
    %c0_i32_0 = arith.constant 0 : i32
    %c0_i32_1 = arith.constant 0 : i32
    return %c0_i32, %c0_i32_0 : i32, i32
  }
  func.func @transform_3(%arg0: i32) -> (i32, i32) {
    %c0_i32 = arith.constant 0 : i32
    %c0_i32_0 = arith.constant 0 : i32
    %c0_i32_1 = arith.constant 0 : i32
    return %c0_i32, %c0_i32_0 : i32, i32
  }
  func.func @transform_4(%arg0: i32) -> (i32, i32) {
    %c0_i32 = arith.constant 0 : i32
    %c0_i32_0 = arith.constant 0 : i32
    %c0_i32_1 = arith.constant 0 : i32
    return %c0_i32, %c0_i32_0 : i32, i32
  }
  func.func @transform_5(%arg0: i32) -> (i32, i32) {
    %c0_i32 = arith.constant 0 : i32
    %c0_i32_0 = arith.constant 0 : i32
    return %arg0, %c0_i32 : i32, i32
  }
  func.func @transform_6(%arg0: i32) -> (i32, i32) {
    %c0_i32 = arith.constant 0 : i32
    %c0_i32_0 = arith.constant 0 : i32
    return %arg0, %c0_i32 : i32, i32
  }
}

</mosaic_0001>

<bundles_post_ra>
// kernel: tpu_custom_call.1
= control target key start
LH: loop header
LB: loop body
LE: loop exit
PB: predicated region body
PF: predicated region fallthrough
CT: control target
= control target key end

     0   :  { %6 = vsyncpa [#allocation3], 0  ;;  %s114_s0 = inlined_call_operand.hbm [shape: f32[8,128], index: 0, kind: input, shape index: {}]   ;;  %s115_s1 = inlined_call_operand.hbm [shape: f32[8,128], index: 1, kind: output, shape index: {}]  }
   0x1   :  { %7 = vsyncpa [#allocation4], 0  ;;  %s13_s8 = sshll.u32 %s114_s0, 4  ;;  %s96_s9 = smov [#allocation2]   ;;  %s14_s8 = int_to_ptr.hbm [resolvable:$true] %s13_s8 }
   0x2   :  { %s15_s10 = sshll.u32 %s96_s9, 4  ;;  %s16_s10 = int_to_ptr.vmem [resolvable:$true] %s15_s10 }
   0x3   :  { %18 = dma.hbm_to_vmem [thread:$0]  %s14_s8, 128, %s16_s10, [#allocation3]  }
   0x4   :  { %92 = dma.done.wait [#allocation3], 128  }
   0x5   :  { %93 = vsyncadd [#allocation3], 4294967168  ;;  %s97_s11 = smov [#allocation5]   ;;  %s32_s15 = sshll.u32 %s115_s1, 4  ;;  %v23_v0 = vld [vmem:[#allocation2] sm:$0xff]  ;;  %s33_s15 = int_to_ptr.hbm [resolvable:$true] %s32_s15 }
   0x6   :  { %s30_s12 = sshll.u32 %s97_s11, 4  ;;  %24 = vst [vmem:[#allocation5] sm:$0xff] %v23_v0  ;;  %s31_s12 = int_to_ptr.vmem [resolvable:$true] %s30_s12 }
   0x7   :  { %35 = dma.vmem_to_hbm [thread:$0]  %s31_s12, 128, %s33_s15, [#allocation4]  }
   0x8   :  { %94 = dma.done.wait [#allocation4], 128  }
   0x9   :  { %95 = vsyncadd [#allocation4], 4294967168 }
   0xa   :  { %40 = vsyncpa [#allocation3], 1 }
   0xb   :  { %41 = vsyncpa [#allocation4], 1 }

// kernel: decoder_forward.1
= control target key start
LH: loop header
LB: loop body
LE: loop exit
PB: predicated region body
PF: predicated region fallthrough
CT: control target
= control target key end

     0   :  { %12 = vsyncpa [#allocation3], 0  ;;  %s307_s0 = inlined_call_operand.vmem [shape: f32[8,128], index: 0, kind: input, shape index: {}]   ;;  %s308_s1 = inlined_call_operand.hbm [shape: f32[128,128], index: 1, kind: input, shape index: {}]   ;;  %s309_s2 = inlined_call_operand.vmem [shape: f32[1,128], index: 2, kind: input, shape index: {}]   ;;  %s310_s3 = inlined_call_operand.hbm [shape: f32[128,128], index: 3, kind: input, shape index: {}]   ;;  %s311_s4 = inlined_call_operand.vmem [shape: f32[1,128], index: 4, kind: input, shape index: {}]   ;;  %s312_s5 = inlined_call_operand.hbm [shape: f32[8,128], index: 5, kind: output, shape index: {0}]   ;;  %s313_s6 = inlined_call_operand.vmem [shape: f32[8,128], index: 6, kind: output, shape index: {1}]  }
   0x1   :  { %13 = vsyncpa [#allocation6], 0 }
   0x2   :  { %14 = vsyncpa [#allocation4], 0  ;;  %s21_s23 = sshll.u32 %s308_s1, 4  ;;  %s246_s24 = smov [#allocation2]   ;;  %s22_s23 = int_to_ptr.hbm [resolvable:$true] %s21_s23 }
   0x3   :  { %s23_s25 = sshll.u32 %s246_s24, 4  ;;  %s36_s28 = sshll.u32 %s310_s3, 4  ;;  %s24_s25 = int_to_ptr.vmem [resolvable:$true] %s23_s25  ;;  %s37_s28 = int_to_ptr.hbm [resolvable:$true] %s36_s28 }
   0x4   :  { %s247_s29 = smov 128   ;;  %s248_s30 = smov 8  }
   0x5   :  { %29 = dma.hbm_to_vmem [thread:$0]  %s22_s23, 2048, %s24_s25, [#allocation3], %s247_s29, %s247_s29, %s248_s30  }
   0x6   :  { %s249_s7 = smov [#allocation5]  }
   0x7   :  { %s38_s8 = sshll.u32 %s249_s7, 4  ;;  %s39_s8 = int_to_ptr.vmem [resolvable:$true] %s38_s8 }
   0x8   :  { %44 = dma.hbm_to_vmem [thread:$0]  %s37_s28, 2048, %s39_s8, [#allocation6], %s247_s29, %s247_s29, %s248_s30  }
   0x9   :  { %240 = dma.done.wait [#allocation3], 2048  }
   0xa   :  { %241 = vsyncadd [#allocation3], 4294965248 }
   0xb   :  { %242 = dma.done.wait [#allocation6], 2048  }
   0xc   :  { %243 = vsyncadd [#allocation6], 4294965248  ;;  %v71_v0 = vld [vmem:[#allocation2 + $0x78] sm:$0xff]  ;;  %v70_v1 = vld [vmem:[#allocation2 + $0x70] sm:$0xff]  ;;  %s250_s11 = smov [#allocation7]   ;;  %s146_s14 = sshll.u32 %s312_s5, 4  ;;  %s147_s14 = int_to_ptr.hbm [resolvable:$true] %s146_s14 }
   0xd   :  { %76 = vmatpush.msra.mxu0 %v71_v0  ;;  %v69_v2 = vld [vmem:[#allocation2 + $0x68] sm:$0xff]  ;;  %v68_v3 = vld [vmem:[#allocation2 + $0x60] sm:$0xff]  ;;  %v113_v4 = vld [vmem:[#allocation5 + $0x78] sm:$0xff]  ;;  %s144_s12 = sshll.u32 %s250_s11, 4  ;;  %s145_s12 = int_to_ptr.vmem [resolvable:$true] %s144_s12 }
   0xe   :  { %v67_v5 = vld [vmem:[#allocation2 + $0x58] sm:$0xff]  ;;  %118 = vmatpush.msra.mxu1 %v113_v4  ;;  %v112_v6 = vld [vmem:[#allocation5 + $0x70] sm:$0xff]  ;;  %v111_v7 = vld [vmem:[#allocation5 + $0x68] sm:$0xff] }
   0xf   :  { %77 = vmatpush.msra.mxu0 %v70_v1  ;;  %v66_v8 = vld [vmem:[#allocation2 + $0x50] sm:$0xff]  ;;  %v110_v9 = vld [vmem:[#allocation5 + $0x60] sm:$0xff]  ;;  %v65_v10 = vld [vmem:[#allocation2 + $0x48] sm:$0xff] }
  0x10   :  { %119 = vmatpush.msra.mxu1 %v112_v6  ;;  %v109_v11 = vld [vmem:[#allocation5 + $0x58] sm:$0xff]  ;;  %v64_v12 = vld [vmem:[#allocation2 + $0x40] sm:$0xff]  ;;  %v108_v13 = vld [vmem:[#allocation5 + $0x50] sm:$0xff] }
  0x11   :  { %78 = vmatpush.msra.mxu0 %v69_v2  ;;  %v63_v14 = vld [vmem:[#allocation2 + $0x38] sm:$0xff]  ;;  %v107_v15 = vld [vmem:[#allocation5 + $0x48] sm:$0xff]  ;;  %v62_v16 = vld [vmem:[#allocation2 + $0x30] sm:$0xff] }
  0x12   :  { %120 = vmatpush.msra.mxu1 %v111_v7  ;;  %v106_v17 = vld [vmem:[#allocation5 + $0x40] sm:$0xff]  ;;  %v61_v18 = vld [vmem:[#allocation2 + $0x28] sm:$0xff]  ;;  %v105_v19 = vld [vmem:[#allocation5 + $0x38] sm:$0xff] }
  0x13   :  { %79 = vmatpush.msra.mxu0 %v68_v3  ;;  %v60_v20 = vld [vmem:[#allocation2 + $0x20] sm:$0xff]  ;;  %v104_v21 = vld [vmem:[#allocation5 + $0x30] sm:$0xff]  ;;  %v59_v22 = vld [vmem:[#allocation2 + $0x18] sm:$0xff] }
  0x14   :  { %121 = vmatpush.msra.mxu1 %v110_v9  ;;  %v103_v23 = vld [vmem:[#allocation5 + $0x28] sm:$0xff]  ;;  %v58_v24 = vld [vmem:[#allocation2 + $0x10] sm:$0xff]  ;;  %v102_v25 = vld [vmem:[#allocation5 + $0x20] sm:$0xff] }
  0x15   :  { %80 = vmatpush.msra.mxu0 %v67_v5  ;;  %v57_v26 = vld [vmem:[#allocation2 + $0x8] sm:$0xff]  ;;  %v101_v27 = vld [vmem:[#allocation5 + $0x18] sm:$0xff]  ;;  %v56_v28 = vld [vmem:[#allocation2] sm:$0xff] }
  0x16   :  { %122 = vmatpush.msra.mxu1 %v109_v11  ;;  %v55_v29 = vld [vmem:[%s307_s0] sm:$0xff]  ;;  %v100_v30 = vld [vmem:[#allocation5 + $0x10] sm:$0xff]  ;;  %v99_v31 = vld [vmem:[#allocation5 + $0x8] sm:$0xff] }
  0x17   :  { %81 = vmatpush.msra.mxu0 %v66_v8  ;;  %v98_v32 = vld [vmem:[#allocation5] sm:$0xff] }
  0x18   :  { %123 = vmatpush.msra.mxu1 %v108_v13  ;;  %v166_v33 = vld [vmem:[%s309_s2] ss:$0 sm:$0xff] }
  0x19   :  { %82 = vmatpush.msra.mxu0 %v65_v10  ;;  %v167_v37 = vld [vmem:[%s311_s4] ss:$0 sm:$0xff] }
  0x1a   :  { %124 = vmatpush.msra.mxu1 %v107_v15 }
  0x1b   :  { %83 = vmatpush.msra.mxu0 %v64_v12 }
  0x1c   :  { %125 = vmatpush.msra.mxu1 %v106_v17 }
  0x1d   :  { %84 = vmatpush.msra.mxu0 %v63_v14 }
  0x1e   :  { %126 = vmatpush.msra.mxu1 %v105_v19 }
  0x1f   :  { %85 = vmatpush.msra.mxu0 %v62_v16 }
  0x20   :  { %127 = vmatpush.msra.mxu1 %v104_v21 }
  0x21   :  { %86 = vmatpush.msra.mxu0 %v61_v18 }
  0x22   :  { %128 = vmatpush.msra.mxu1 %v103_v23 }
  0x23   :  { %87 = vmatpush.msra.mxu0 %v60_v20 }
  0x24   :  { %129 = vmatpush.msra.mxu1 %v102_v25 }
  0x25   :  { %88 = vmatpush.msra.mxu0 %v59_v22 }
  0x26   :  { %130 = vmatpush.msra.mxu1 %v101_v27 }
  0x27   :  { %89 = vmatpush.msra.mxu0 %v58_v24 }
  0x28   :  { %131 = vmatpush.msra.mxu1 %v100_v30 }
  0x29   :  { %90 = vmatpush.msra.mxu0 %v57_v26 }
  0x2a   :  { %132 = vmatpush.msra.mxu1 %v99_v31 }
  0x2b   :  { %91 = vmatpush.msra.mxu0 %v56_v28 }
  0x2c   :  { %92 = vmatmul.f32.vlgmr.msra.gmra.mxu0 %v55_v29  ;;  %133 = vmatpush.msra.mxu1 %v98_v32 }
  0xa9   :  { %v93_v34 = vpop.f32.mrf.mxu0 }
  0xaa   :  { %v94_v35 = vadd.f32 %v166_v33, %v93_v34 }
  0xac   :  { %v96_v36 = vmax.f32 %v94_v35, 0.0 }
  0xae   :  { %97 = vst [vmem:[#allocation7] sm:$0xff] %v96_v36  ;;  %134 = vmatmul.f32.vlgmr.msra.gmra.mxu1 %v96_v36 }
  0xaf   :  { %149 = dma.vmem_to_hbm [thread:$0]  %s145_s12, 128, %s147_s14, [#allocation4]  }
 0x12b   :  { %v135_v38 = vpop.f32.mrf.mxu1 }
 0x12c   :  { %v136_v39 = vadd.f32 %v167_v37, %v135_v38 }
 0x12e   :  { %138 = vst [vmem:[%s313_s6] sm:$0xff] %v136_v39 }
 0x12f   :  { %244 = dma.done.wait [#allocation4], 128  }
 0x130   :  { %245 = vsyncadd [#allocation4], 4294967168 }
 0x131   :  { %158 = vsyncpa [#allocation3], 1 }
 0x132   :  { %159 = vsyncpa [#allocation6], 1 }
 0x133   :  { %160 = vsyncpa [#allocation4], 1 }

</bundles_post_ra>
